<compile_context>
chip_gen: v5e
topology: v5e:2x2
jax: 0.10.0
libtpu: 0.0.40
codegen_flags: <defaults>
</compile_context>

<pallas_src>
import functools

import jax
import jax.numpy as jnp
from jax.experimental import pallas as pl
from jax.experimental.pallas import tpu as pltpu


# ----------------------------- Pallas kernel ------------------------------- #
def diffusion_loss_kernel(x_ref, noise_ref, t_ref, temb_ref, coef_ref,
                          w1_ref, w2_ref, psum_ref):
    """Fused perturb_x + in-kernel gathers + MLP denoiser + partial-sum MSE.

    x_ref, noise_ref : (TM, F)    f32 row tiles (streamed)
    t_ref            : (TM, 1)    int32 timestep per row (streamed, tiny)
    temb_ref         : (Tpad, F)  bf16 time-embedding table (resident)
    coef_ref         : (2, Tpad)  f32: row0=sqrt_ac, row1=sqrt(1-ac) (resident)
    w1_ref, w2_ref   : (F, H) / (H, F) bf16 weights (resident)
    psum_ref         : (1, 8, F)  f32 per-grid-block partial sums (lane dense)
    """
    x = x_ref[...]                                            # f32
    noise = noise_ref[...]                                    # f32
    tm = x.shape[0]
    t_pad = coef_ref.shape[1]

    # One-hot row selector for the in-kernel gathers.
    t_col = t_ref[...]                                        # (TM, 1) int32
    tbl_ids = jax.lax.broadcasted_iota(jnp.int32, (tm, t_pad), 1)
    onehot = (t_col == tbl_ids)                               # (TM, Tpad) bool

    # extract(sqrt_ac, t) / extract(sqrt_1mac, t): exact f32 selection via
    # multiply + lane reduction (XLU has slack; avoids MXU f32 rounding).
    oh_f32 = onehot.astype(jnp.float32)
    c1 = jnp.sum(oh_f32 * coef_ref[0:1, :], axis=-1, keepdims=True)   # (TM, 1)
    c2 = jnp.sum(oh_f32 * coef_ref[1:2, :], axis=-1, keepdims=True)   # (TM, 1)

    # perturb_x in f32 (v5e-safe; no bf16 VPU dependence).
    perturbed = c1 * x + c2 * noise

    # Time-embedding row gather: bf16 one-hot @ bf16 table on the MXU
    # (exactly one 1.0 * bf16 product per row, f32 accumulation -> exact).
    temb = jnp.dot(onehot.astype(jnp.bfloat16), temb_ref[...],
                   preferred_element_type=jnp.float32)        # (TM, F) f32

    # Stand-in denoiser: relu((perturbed + temb) @ W1) @ W2.
    # bf16 MXU inputs, f32 accumulation.
    h_in = (perturbed + temb).astype(jnp.bfloat16)
    h = jnp.maximum(
        jnp.dot(h_in, w1_ref[...], preferred_element_type=jnp.float32), 0.0)
    eps_hat = jnp.dot(h.astype(jnp.bfloat16), w2_ref[...],
                      preferred_element_type=jnp.float32)

    # l2 loss vs target = noise (mean_type='eps').  Lane-dense reduction:
    # fold (TM, F) -> (8, F) with a log-depth pairwise tree over 8-row chunks
    # (pure VPU, no cross-lane work).  Final reduce + mean happen in wrapper.
    d = eps_hat - noise
    sq = d * d
    chunks = [sq[r:r + 8, :] for r in range(0, tm, 8)]        # static unroll
    while len(chunks) > 1:
        nxt = [chunks[i] + chunks[i + 1] for i in range(0, len(chunks) - 1, 2)]
        if len(chunks) % 2:
            nxt.append(chunks[-1])
        chunks = nxt
    psum_ref[0] = chunks[0]


# --------------------------- VMEM budget helper ------------------------------ #
def _vmem_limit_bytes(tile_m, feat, hidden, t_pad):
    streams = 2 * (tile_m * feat * 4        # x     (f32, double-buffered)
                   + tile_m * feat * 4      # noise (f32)
                   + tile_m * 128 * 4)      # t     (int32, lane dim padded 1->128)
    resident = 2 * (t_pad * feat * 2        # time-emb table (bf16)
                    + 8 * t_pad * 4         # coef table (f32, sublanes 2->8)
                    + feat * hidden * 2     # W1 (bf16)
                    + hidden * feat * 2)    # W2 (bf16)
    outputs = 2 * (8 * feat * 4)
    total = streams + resident + outputs
    # 2x headroom for Mosaic-internal scratch; clamp so the same kernel stays
    # inside v7x's 64 MiB physical VMEM when tile_m / F / H are scaled up.
    return int(min(max(2 * total, 4 << 20), 48 << 20))


# ------------------------------- Wrapper ------------------------------------ #
def gaussian_diffusion_forward(x, t, noise, params, schedule, *, tile_m=256):
    """Mirrors GaussianDiffusion.forward / get_losses (cond='none', eps, l2)."""
    B, L, F = x.shape
    N = B * L
    H = params["w1"].shape[1]
    T = schedule["sqrt_alphas_cumprod"].shape[0]
    tile_m = min(tile_m, N)
    # TODO(synk): add a remainder tile (pl.cdiv grid + masked partial sum) to
    # support arbitrary B*L; current version requires an even split.
    assert N % tile_m == 0 and tile_m % 8 == 0
    assert F % 128 == 0 and H % 128 == 0, "keep the lane dimension dense"

    # Streams stay in their HBM dtypes (f32 / int32) -- no wrapper-side casts.
    x2d = x.reshape(N, F)
    noise2d = noise.reshape(N, F)
    t2d = t.reshape(N, 1).astype(jnp.int32)

    # Small resident lookup tables (gathered in-kernel), timestep axis padded
    # to a lane-friendly size.
    T_pad = ((T + 127) // 128) * 128
    temb_tab = jnp.pad(params["time_emb"], ((0, T_pad - T), (0, 0))
                       ).astype(jnp.bfloat16)                        # (T_pad, F)
    coef_tab = jnp.pad(
        jnp.stack([schedule["sqrt_alphas_cumprod"],
                   schedule["sqrt_one_minus_alphas_cumprod"]], axis=0),
        ((0, 0), (0, T_pad - T))).astype(jnp.float32)                # (2, T_pad)
    w1 = params["w1"].astype(jnp.bfloat16)
    w2 = params["w2"].astype(jnp.bfloat16)

    num_tiles = N // tile_m

    partials = pl.pallas_call(
        diffusion_loss_kernel,
        out_shape=jax.ShapeDtypeStruct((num_tiles, 8, F), jnp.float32),
        grid_spec=pltpu.PrefetchScalarGridSpec(
            num_scalar_prefetch=0,
            grid=(num_tiles,),
            in_specs=[
                pl.BlockSpec((tile_m, F), lambda i: (i, 0)),   # x rows (f32)
                pl.BlockSpec((tile_m, F), lambda i: (i, 0)),   # noise rows (f32)
                pl.BlockSpec((tile_m, 1), lambda i: (i, 0)),   # t rows (int32)
                pl.BlockSpec((T_pad, F), lambda i: (0, 0)),    # time-emb table
                pl.BlockSpec((2, T_pad), lambda i: (0, 0)),    # [sqrt_ac; sqrt_1mac]
                pl.BlockSpec((F, H), lambda i: (0, 0)),        # W1 (resident)
                pl.BlockSpec((H, F), lambda i: (0, 0)),        # W2 (resident)
            ],
            out_specs=pl.BlockSpec((1, 8, F), lambda i: (i, 0, 0)),
        ),
        compiler_params=pltpu.CompilerParams(
            # Each grid step owns its own partial-sum block -> fully parallel
            # row axis (shardable across both TensorCores on v7x).
            dimension_semantics=("parallel",),
            vmem_limit_bytes=_vmem_limit_bytes(tile_m, F, H, T_pad),
        ),
    )(x2d, noise2d, t2d, temb_tab, coef_tab, w1, w2)

    # Final cross-lane reduction + mean over all N*F elements (MSE).
    return jnp.sum(partials) / jnp.float32(N * F)


# ----------------------- Pure-JAX reference (same dtype flow) --------------- #
def reference_loss(x, t, noise, params, schedule):
    B, L, F = x.shape
    N = B * L
    x2d = x.reshape(N, F).astype(jnp.float32)
    n2d = noise.reshape(N, F).astype(jnp.float32)
    temb = params["time_emb"][t].astype(jnp.bfloat16).astype(jnp.float32)
    w1 = params["w1"].astype(jnp.bfloat16)
    w2 = params["w2"].astype(jnp.bfloat16)
    c1 = schedule["sqrt_alphas_cumprod"][t][:, None]
    c2 = schedule["sqrt_one_minus_alphas_cumprod"][t][:, None]
    perturbed = c1 * x2d + c2 * n2d
    h_in = (perturbed + temb).astype(jnp.bfloat16)
    h = jnp.maximum(jnp.dot(h_in, w1, preferred_element_type=jnp.float32), 0.0)
    eps_hat = jnp.dot(h.astype(jnp.bfloat16), w2,
                      preferred_element_type=jnp.float32)
    d = eps_hat - n2d
    return jnp.mean(d * d)


# --------------------------- Parameter / schedule setup --------------------- #
def make_schedule(num_timesteps):
    betas = jnp.linspace(1e-4, 2e-2, num_timesteps, dtype=jnp.float32)
    alphas = 1.0 - betas
    alphas_bar = jnp.cumprod(alphas)
    return {
        "betas": betas,
        "sqrt_alphas_cumprod": jnp.sqrt(alphas_bar),
        "sqrt_one_minus_alphas_cumprod": jnp.sqrt(1.0 - alphas_bar),
    }


def make_model_params(key, num_timesteps, feat, hidden):
    k1, k2, k3 = jax.random.split(key, 3)
    return {
        "w1": jax.random.normal(k1, (feat, hidden), jnp.float32) / jnp.sqrt(feat),
        "w2": jax.random.normal(k2, (hidden, feat), jnp.float32) / jnp.sqrt(hidden),
        "time_emb": jax.random.normal(k3, (num_timesteps, feat), jnp.float32) * 0.02,
    }


# ---------------------------------- Main ------------------------------------ #
if __name__ == "__main__":
    # N = B*L = 512 rows; F lane-dense; H=256 fills the 256-wide MXU (v6e/v7x).
    B, L, F, H = 4, 128, 128, 256
    NUM_TIMESTEPS = 100

    key = jax.random.PRNGKey(0)
    k_x, k_t, k_noise, k_params = jax.random.split(key, 4)

    x = jax.random.normal(k_x, (B, L, F), jnp.float32)
    # forward(): t = randint(0, num_timesteps, (b * l,))
    t = jax.random.randint(k_t, (B * L,), 0, NUM_TIMESTEPS, jnp.int32)
    # get_losses(): noise = randn_like(x.reshape(-1, f))
    noise = jax.random.normal(k_noise, (B * L, F), jnp.float32)

    schedule = make_schedule(NUM_TIMESTEPS)
    params = make_model_params(k_params, NUM_TIMESTEPS, F, H)

    # tile_m=128 -> 4 grid steps (even split + pipelining on v7x's 2 TCs);
    # prefer 256-512 row tiles for production-size N on single-TC v5e/v6e.
    fwd = jax.jit(functools.partial(gaussian_diffusion_forward,
                                    schedule=schedule, params=params,
                                    tile_m=128))
    loss = fwd(x, t, noise)
    jax.block_until_ready(loss)

    ref = reference_loss(x, t, noise, params, schedule)
    assert loss.shape == () and bool(jnp.isfinite(loss))
    assert jnp.allclose(loss, ref, rtol=1e-2, atol=1e-5), (float(loss), float(ref))
    print("KERNEL_OK")
</pallas_src>

<mosaic_0001>
module attributes {stable_mosaic.version = 11 : i64} {
  func.func @diffusion_loss_kernel(%arg0: i32, %arg1: memref<128x128xf32, #tpu.memory_space<vmem>>, %arg2: memref<128x128xf32, #tpu.memory_space<vmem>>, %arg3: memref<128x1xi32, #tpu.memory_space<vmem>>, %arg4: memref<128x128xbf16, #tpu.memory_space<vmem>>, %arg5: memref<2x128xf32, #tpu.memory_space<vmem>>, %arg6: memref<128x256xbf16, #tpu.memory_space<vmem>>, %arg7: memref<256x128xbf16, #tpu.memory_space<vmem>>, %arg8: memref<1x8x128xf32, #tpu.memory_space<vmem>>) attributes {dimension_semantics = [#tpu.dimension_semantics<parallel>], iteration_bounds = array<i64: 4>, scalar_prefetch = 0 : i64, scratch_operands = 0 : i64, tpu.core_type = #tpu.core_type<tc>, window_params = [{transform_indices = @transform_0, window_bounds = array<i64: 128, 128>}, {transform_indices = @transform_1, window_bounds = array<i64: 128, 128>}, {transform_indices = @transform_2, window_bounds = array<i64: 128, 1>}, {pipeline_mode = #tpu.pipeline_mode<synchronous>, transform_indices = @transform_3, window_bounds = array<i64: 128, 128>}, {pipeline_mode = #tpu.pipeline_mode<synchronous>, transform_indices = @transform_4, window_bounds = array<i64: 2, 128>}, {pipeline_mode = #tpu.pipeline_mode<synchronous>, transform_indices = @transform_5, window_bounds = array<i64: 128, 256>}, {pipeline_mode = #tpu.pipeline_mode<synchronous>, transform_indices = @transform_6, window_bounds = array<i64: 256, 128>}, {transform_indices = @transform_7, window_bounds = array<i64: 1, 8, 128>}]} {
    %c0 = arith.constant 0 : index
    %c0_0 = arith.constant 0 : index
    %0 = vector.load %arg1[%c0, %c0_0] : memref<128x128xf32, #tpu.memory_space<vmem>>, vector<128x128xf32>
    %c0_1 = arith.constant 0 : index
    %c0_2 = arith.constant 0 : index
    %1 = vector.load %arg2[%c0_1, %c0_2] : memref<128x128xf32, #tpu.memory_space<vmem>>, vector<128x128xf32>
    %c0_3 = arith.constant 0 : index
    %c0_4 = arith.constant 0 : index
    %2 = vector.load %arg3[%c0_3, %c0_4] : memref<128x1xi32, #tpu.memory_space<vmem>>, vector<128x1xi32>
    %3 = tpu.iota {dimensions = array<i32: 1>} : vector<128x128xi32>
    %4 = vector.broadcast %2 : vector<128x1xi32> to vector<128x128xi32>
    %5 = arith.cmpi eq, %4, %3 : vector<128x128xi32>
    %6 = arith.extui %5 : vector<128x128xi1> to vector<128x128xi32>
    %7 = arith.sitofp %6 : vector<128x128xi32> to vector<128x128xf32>
    %c0_5 = arith.constant 0 : index
    %c0_6 = arith.constant 0 : index
    %8 = vector.load %arg5[%c0_5, %c0_6] : memref<2x128xf32, #tpu.memory_space<vmem>>, vector<1x128xf32>
    %9 = vector.broadcast %8 : vector<1x128xf32> to vector<128x128xf32>
    %10 = arith.mulf %7, %9 : vector<128x128xf32>
    %cst = arith.constant dense<0.000000e+00> : vector<128xf32>
    %11 = vector.multi_reduction <add>, %10, %cst [1] : vector<128x128xf32> to vector<128xf32>
    %12 = vector.shape_cast %11 : vector<128xf32> to vector<128x1xf32>
    %c1 = arith.constant 1 : index
    %c0_7 = arith.constant 0 : index
    %13 = vector.load %arg5[%c1, %c0_7] : memref<2x128xf32, #tpu.memory_space<vmem>>, vector<1x128xf32>
    %14 = vector.broadcast %13 : vector<1x128xf32> to vector<128x128xf32>
    %15 = arith.mulf %7, %14 : vector<128x128xf32>
    %cst_8 = arith.constant dense<0.000000e+00> : vector<128xf32>
    %16 = vector.multi_reduction <add>, %15, %cst_8 [1] : vector<128x128xf32> to vector<128xf32>
    %17 = vector.shape_cast %16 : vector<128xf32> to vector<128x1xf32>
    %18 = vector.broadcast %12 : vector<128x1xf32> to vector<128x128xf32>
    %19 = arith.mulf %18, %0 : vector<128x128xf32>
    %20 = vector.broadcast %17 : vector<128x1xf32> to vector<128x128xf32>
    %21 = arith.mulf %20, %1 : vector<128x128xf32>
    %22 = arith.addf %19, %21 : vector<128x128xf32>
    %23 = arith.extui %5 : vector<128x128xi1> to vector<128x128xi32>
    %24 = arith.sitofp %23 : vector<128x128xi32> to vector<128x128xf32>
    %25 = arith.truncf %24 : vector<128x128xf32> to vector<128x128xbf16>
    %c0_9 = arith.constant 0 : index
    %c0_10 = arith.constant 0 : index
    %26 = vector.load %arg4[%c0_9, %c0_10] : memref<128x128xbf16, #tpu.memory_space<vmem>>, vector<128x128xbf16>
    %cst_11 = arith.constant dense<0.000000e+00> : vector<128x128xf32>
    %27 = tpu.matmul %25, %26, %cst_11 {dimension_numbers = #tpu.dot_dimension_numbers<[1], [0], [0], [1], [0, 0, 1, 1], [], []>} : vector<128x128xbf16>, vector<128x128xbf16>, vector<128x128xf32> -> vector<128x128xf32>
    %28 = arith.addf %22, %27 : vector<128x128xf32>
    %29 = arith.truncf %28 : vector<128x128xf32> to vector<128x128xbf16>
    %c0_12 = arith.constant 0 : index
    %c0_13 = arith.constant 0 : index
    %30 = vector.load %arg6[%c0_12, %c0_13] : memref<128x256xbf16, #tpu.memory_space<vmem>>, vector<128x256xbf16>
    %cst_14 = arith.constant dense<0.000000e+00> : vector<128x256xf32>
    %31 = tpu.matmul %29, %30, %cst_14 {dimension_numbers = #tpu.dot_dimension_numbers<[1], [0], [0], [1], [0, 0, 1, 1], [], []>} : vector<128x128xbf16>, vector<128x256xbf16>, vector<128x256xf32> -> vector<128x256xf32>
    %cst_15 = arith.constant 0.000000e+00 : f32
    %32 = vector.broadcast %cst_15 : f32 to vector<128x256xf32>
    %33 = arith.maximumf %31, %32 : vector<128x256xf32>
    %34 = arith.truncf %33 : vector<128x256xf32> to vector<128x256xbf16>
    %c0_16 = arith.constant 0 : index
    %c0_17 = arith.constant 0 : index
    %35 = vector.load %arg7[%c0_16, %c0_17] : memref<256x128xbf16, #tpu.memory_space<vmem>>, vector<256x128xbf16>
    %cst_18 = arith.constant dense<0.000000e+00> : vector<128x128xf32>
    %36 = tpu.matmul %34, %35, %cst_18 {dimension_numbers = #tpu.dot_dimension_numbers<[1], [0], [0], [1], [0, 0, 1, 1], [], []>} : vector<128x256xbf16>, vector<256x128xbf16>, vector<128x128xf32> -> vector<128x128xf32>
    %37 = arith.subf %36, %1 : vector<128x128xf32>
    %38 = arith.mulf %37, %37 : vector<128x128xf32>
    %39 = vector.extract_strided_slice %38 {offsets = [0, 0], sizes = [8, 128], strides = [1, 1]} : vector<128x128xf32> to vector<8x128xf32>
    %40 = vector.extract_strided_slice %38 {offsets = [8, 0], sizes = [8, 128], strides = [1, 1]} : vector<128x128xf32> to vector<8x128xf32>
    %41 = vector.extract_strided_slice %38 {offsets = [16, 0], sizes = [8, 128], strides = [1, 1]} : vector<128x128xf32> to vector<8x128xf32>
    %42 = vector.extract_strided_slice %38 {offsets = [24, 0], sizes = [8, 128], strides = [1, 1]} : vector<128x128xf32> to vector<8x128xf32>
    %43 = vector.extract_strided_slice %38 {offsets = [32, 0], sizes = [8, 128], strides = [1, 1]} : vector<128x128xf32> to vector<8x128xf32>
    %44 = vector.extract_strided_slice %38 {offsets = [40, 0], sizes = [8, 128], strides = [1, 1]} : vector<128x128xf32> to vector<8x128xf32>
    %45 = vector.extract_strided_slice %38 {offsets = [48, 0], sizes = [8, 128], strides = [1, 1]} : vector<128x128xf32> to vector<8x128xf32>
    %46 = vector.extract_strided_slice %38 {offsets = [56, 0], sizes = [8, 128], strides = [1, 1]} : vector<128x128xf32> to vector<8x128xf32>
    %47 = vector.extract_strided_slice %38 {offsets = [64, 0], sizes = [8, 128], strides = [1, 1]} : vector<128x128xf32> to vector<8x128xf32>
    %48 = vector.extract_strided_slice %38 {offsets = [72, 0], sizes = [8, 128], strides = [1, 1]} : vector<128x128xf32> to vector<8x128xf32>
    %49 = vector.extract_strided_slice %38 {offsets = [80, 0], sizes = [8, 128], strides = [1, 1]} : vector<128x128xf32> to vector<8x128xf32>
    %50 = vector.extract_strided_slice %38 {offsets = [88, 0], sizes = [8, 128], strides = [1, 1]} : vector<128x128xf32> to vector<8x128xf32>
    %51 = vector.extract_strided_slice %38 {offsets = [96, 0], sizes = [8, 128], strides = [1, 1]} : vector<128x128xf32> to vector<8x128xf32>
    %52 = vector.extract_strided_slice %38 {offsets = [104, 0], sizes = [8, 128], strides = [1, 1]} : vector<128x128xf32> to vector<8x128xf32>
    %53 = vector.extract_strided_slice %38 {offsets = [112, 0], sizes = [8, 128], strides = [1, 1]} : vector<128x128xf32> to vector<8x128xf32>
    %54 = vector.extract_strided_slice %38 {offsets = [120, 0], sizes = [8, 128], strides = [1, 1]} : vector<128x128xf32> to vector<8x128xf32>
    %55 = arith.addf %39, %40 : vector<8x128xf32>
    %56 = arith.addf %41, %42 : vector<8x128xf32>
    %57 = arith.addf %43, %44 : vector<8x128xf32>
    %58 = arith.addf %45, %46 : vector<8x128xf32>
    %59 = arith.addf %47, %48 : vector<8x128xf32>
    %60 = arith.addf %49, %50 : vector<8x128xf32>
    %61 = arith.addf %51, %52 : vector<8x128xf32>
    %62 = arith.addf %53, %54 : vector<8x128xf32>
    %63 = arith.addf %55, %56 : vector<8x128xf32>
    %64 = arith.addf %57, %58 : vector<8x128xf32>
    %65 = arith.addf %59, %60 : vector<8x128xf32>
    %66 = arith.addf %61, %62 : vector<8x128xf32>
    %67 = arith.addf %63, %64 : vector<8x128xf32>
    %68 = arith.addf %65, %66 : vector<8x128xf32>
    %69 = arith.addf %67, %68 : vector<8x128xf32>
    %c0_19 = arith.constant 0 : index
    %c0_20 = arith.constant 0 : index
    %c0_21 = arith.constant 0 : index
    %70 = vector.load %arg8[%c0_19, %c0_20, %c0_21] : memref<1x8x128xf32, #tpu.memory_space<vmem>>, vector<1x8x128xf32>
    %71 = vector.shape_cast %70 : vector<1x8x128xf32> to vector<8x128xf32>
    %72 = vector.shape_cast %69 : vector<8x128xf32> to vector<1x8x128xf32>
    tpu.vector_store %arg8[%c0_19, %c0_20, %c0_21], %72 {strides = array<i32>} : memref<1x8x128xf32, #tpu.memory_space<vmem>>, vector<1x8x128xf32>,
    return
  }
  func.func @transform_0(%arg0: i32) -> (i32, i32) {
    %c0_i32 = arith.constant 0 : i32
    %c0_i32_0 = arith.constant 0 : i32
    return %arg0, %c0_i32 : i32, i32
  }
  func.func @transform_1(%arg0: i32) -> (i32, i32) {
    %c0_i32 = arith.constant 0 : i32
    %c0_i32_0 = arith.constant 0 : i32
    return %arg0, %c0_i32 : i32, i32
  }
  func.func @transform_2(%arg0: i32) -> (i32, i32) {
    %c0_i32 = arith.constant 0 : i32
    %c0_i32_0 = arith.constant 0 : i32
    return %arg0, %c0_i32 : i32, i32
  }
  func.func @transform_3(%arg0: i32) -> (i32, i32) {
    %c0_i32 = arith.constant 0 : i32
    %c0_i32_0 = arith.constant 0 : i32
    %c0_i32_1 = arith.constant 0 : i32
    return %c0_i32, %c0_i32_0 : i32, i32
  }
  func.func @transform_4(%arg0: i32) -> (i32, i32) {
    %c0_i32 = arith.constant 0 : i32
    %c0_i32_0 = arith.constant 0 : i32
    %c0_i32_1 = arith.constant 0 : i32
    return %c0_i32, %c0_i32_0 : i32, i32
  }
  func.func @transform_5(%arg0: i32) -> (i32, i32) {
    %c0_i32 = arith.constant 0 : i32
    %c0_i32_0 = arith.constant 0 : i32
    %c0_i32_1 = arith.constant 0 : i32
    return %c0_i32, %c0_i32_0 : i32, i32
  }
  func.func @transform_6(%arg0: i32) -> (i32, i32) {
    %c0_i32 = arith.constant 0 : i32
    %c0_i32_0 = arith.constant 0 : i32
    %c0_i32_1 = arith.constant 0 : i32
    return %c0_i32, %c0_i32_0 : i32, i32
  }
  func.func @transform_7(%arg0: i32) -> (i32, i32, i32) {
    %c0_i32 = arith.constant 0 : i32
    %c0_i32_0 = arith.constant 0 : i32
    %c0_i32_1 = arith.constant 0 : i32
    return %arg0, %c0_i32, %c0_i32_0 : i32, i32, i32
  }
}

</mosaic_0001>

<bundles_post_ra>
// kernel: gaussian_diffusion_forward.1
= control target key start
LH: loop header
LB: loop body
LE: loop exit
PB: predicated region body
PF: predicated region fallthrough
CT: control target
= control target key end

     0   :  { %12 = vsyncpa [#allocation3], 0  ;;  %s2449_s0 = inlined_call_operand.vmem [shape: f32[512,128], index: 0, kind: input, shape index: {}]   ;;  %s2450_s1 = inlined_call_operand.hbm [shape: f32[512,128], index: 1, kind: input, shape index: {}]   ;;  %s2451_s2 = inlined_call_operand.vmem [shape: s32[512,1], index: 2, kind: input, shape index: {}]   ;;  %s2452_s3 = inlined_call_operand.hbm [shape: bf16[128,128], index: 3, kind: input, shape index: {}]   ;;  %s2453_s4 = inlined_call_operand.vmem [shape: f32[2,128], index: 4, kind: input, shape index: {}]   ;;  %s2454_s5 = inlined_call_operand.hbm [shape: bf16[128,256], index: 5, kind: input, shape index: {}]   ;;  %s2455_s6 = inlined_call_operand.hbm [shape: bf16[256,128], index: 6, kind: input, shape index: {}]   ;;  %s2456_s7 = inlined_call_operand.vmem [shape: f32[4,8,128], index: 7, kind: output, shape index: {}]  }
   0x1   :  { %14 = vsyncpa [#allocation3 + $0x1], 0 }
   0x2   :  { %15 = vsyncpa [#allocation5], 0 }
   0x3   :  { %16 = vsyncpa [#allocation8], 0  ;;  %s2041_s24 = smov 0   ;;  %s2043_s25 = smov 0  }
   0x4   :  { %s2045_s26 = smov 0   ;;  %s2047_s27 = smov 0  }
   0x5 LB: > { %s2060_s28 = sadd.s32 4294967295, %s1989_s27   ;;  %p68_p0 = scmp.ne.s32.totalorder %s1981_s25, %s1977_s24  ;;  %s1989_s27 = sphi %s2047_s27, %s2464_s27   ;;  %s1985_s26 = sphi %s2045_s26, %s2463_s26   ;;  %s1981_s25 = sphi %s2043_s25, %s2462_s25   ;;  %s1977_s24 = sphi %s2041_s24, %s2461_s24  }
   0x6   : > { %p69_p1 = scmp.eq.s32.totalorder %s2060_s28, 0  ;;  %p1468_p2 = scmp.ge.s32.totalorder %s1989_s27, 1 }
   0x7   : > { %p215_p3 = scmp.lt.s32.totalorder %s1989_s27, 5  ;;  %s226_s9 = sshll.u32 %s2452_s3, 4  ;;  %s227_s9 = int_to_ptr.hbm [resolvable:$true] %s226_s9 }
   0x8   : > { %p2068_p4 = por %p69_p1, %p68_p0  ;;  %s1991_s11 = smov [#allocation4]  }
   0x9   : > { %p2075_p5 = pnand %p1468_p2, %p215_p3  ;;  %s228_s12 = sshll.u32 %s1991_s11, 4  ;;  %s229_s12 = int_to_ptr.vmem [resolvable:$true] %s228_s12 }
   0xa   : > { %s243_s16 = sshll.u32 %s2454_s5, 4  ;;  %s1992_s17 = smov 64   ;;  %s244_s16 = int_to_ptr.hbm [resolvable:$true] %s243_s16 }
   0xb   : > { %p1759_p6 = pneg %p2075_p5  ;;  %s1993_s18 = smov 4  }
   0xc   : > { %s1994_s19 = smov [#allocation6]   ;;  %s1995_s21 = smov 128  }
   0xd   : > { %p2083_p7 = pnand %p1759_p6, %p69_p1  ;;  %s245_s20 = sshll.u32 %s1994_s19, 4  ;;  %s246_s20 = int_to_ptr.vmem [resolvable:$true] %s245_s20 }
   0xe   : > { %s1996_s22 = smov 8   ;;  %s257_s30 = sshll.u32 %s2455_s6, 4  ;;  %s258_s30 = int_to_ptr.hbm [resolvable:$true] %s257_s30 }
   0xf   : > { %1762 = dma.hbm_to_vmem [thread:$0]  (!%p2083_p7), %s227_s9, 1024, %s229_s12, [#allocation5], %s1992_s17, %s1992_s17, %s1993_s18  }
  0x10   : > { %1765 = dma.hbm_to_vmem [thread:$0]  (!%p2083_p7), %s244_s16, 2048, %s246_s20, [#allocation5], %s1995_s21, %s1995_s21, %s1996_s22  }
  0x11   : > { %s1997_s8 = smov [#allocation7]   ;;  %s2103_s11 = sadd.s32 1, %s1989_s27  }
  0x12   : > { %s259_s9 = sshll.u32 %s1997_s8, 4  ;;  %s52_s12 = ssub.s32 %s1989_s27, %s2103_s11  ;;  %s260_s9 = int_to_ptr.vmem [resolvable:$true] %s259_s9 }
  0x13   : > { %1768 = dma.hbm_to_vmem [thread:$0]  (!%p2083_p7), %s258_s30, 2048, %s260_s9, [#allocation8], %s1992_s17, %s1992_s17, %s1993_s18  }
  0x14   : > { %s55_s14 = sadd.s32 1, %s1985_s26  ;;  %p53_p8 = scmp.eq.s32.totalorder %s52_s12, 0 }
  0x15   : > { %p62_p9 = scmp.ne.s32.totalorder %s1985_s26, %s1981_s25  ;;  %p63_p10 = scmp.eq.s32.totalorder %s1989_s27, 0 }
  0x16   : > { %p1776_p11 = scmp.lt.s32.totalorder %s1989_s27, 4  ;;  %s282_s16 = sand.u32 1, %s1985_s26  }
  0x17   : > { %s2113_s15 = scalar_select %p53_p8, %s1985_s26, %s55_s14  }
  0x18   : > { %p64_p12 = por %p63_p10, %p62_p9  ;;  %s1473_s19 = sshll.u32 %s282_s16, 7 }
  0x19   : > { %s1680_s20 = sshll.u32 %s1989_s27, 7  ;;  %s286_s17 = scalar_lea.vmem [#allocation2], %s1473_s19 }
  0x1a   : > { %s291_s13 = scalar_lea.hbm %s2450_s1, %s1680_s20  ;;  %s294_s18 = sshll.u32 %s286_s17, 4  ;;  %s295_s18 = int_to_ptr.vmem [resolvable:$true] %s294_s18 }
  0x1b   : > { %s292_s30 = sshll.u32 %s291_s13, 4  ;;  %p2120_p13 = pnand %p1776_p11, %p64_p12  ;;  %s293_s30 = int_to_ptr.hbm [resolvable:$true] %s292_s30 }
  0x1c   : > { %s283_s9 = scalar_lea.sflag [#allocation3], %s282_s16  ;;  %s1917_s12 = sshra.s32 %s293_s30, 4  ;;  %s1918_s12 = int_to_ptr.hbm [resolvable:$true] %s1917_s12 }
  0x1d   : > { %s1919_s14 = scalar_lea.hbm %s1918_s12, 128  ;;  %p1921_p2 = pneg %p2120_p13 }
  0x1e   : > { %p1920_p0 = scmp.ne.s32.totalorder %s1918_s12, %s1919_s14  ;;  %s1924_s20 = scalar_lea.hbm %s2450_s1, 512 }
  0x1f   : > { %p1925_p7 = scmp.lt.s32.totalorder %s1918_s12, %s2450_s1  ;;  %p1926_p8 = scmp.lt.s32.totalorder %s1924_s20, %s1919_s14 }
  0x20   : > { %p1922_p3 = pnand %p1921_p2, %p1920_p0 }
  0x21   : > { %p1927_p9 = por %p1926_p8, %p1925_p7 }
  0x22   : > { %p1923_p6 = pneg %p1922_p3 }
  0x24   : > { %p1928_p10 = pnand %p1927_p9, %p1923_p6 }
  0x26   : > { %1931 = shalt.err (!%p1928_p10)
}
  0x27   : > { %1772 = dma.hbm_to_vmem [thread:$0]  (!%p2120_p13), %s293_s30, 2048, %s295_s18, %s283_s9, %s1995_s21, %s1995_s21, %s1996_s22  }
  0x28   : > { %315 = sbr.rel (%p2075_p5) target bundleno = 725 (0x2d5), region = 48  ;;  %s317_s16 = sand.u32 (!%p2075_p5), 1, %s1981_s25  }
  0x29   : > { %s1477_s13 = sshll.u32 (!%p2075_p5), %s317_s16, 7  ;;  %s318_s17 = scalar_lea.sflag (!%p2075_p5), [#allocation3], %s317_s16 }
  0x2a   : > { %s2140_s27 = scalar_lea.vmem (!%p2075_p5), [#allocation2], %s1477_s13 }
  0x2d   : > { %1964 = dma.done.wait (%p2068_p4), %s318_s17, 2048  }
  0x2e   : > { %1966 = vsyncadd (%p2068_p4), %s318_s17, 4294965248 }
  0x2f   : > { %1968 = dma.done.wait (%p69_p1), [#allocation5], 3072  }
  0x30   : > { %1970 = vsyncadd (%p69_p1), [#allocation5], 4294964224 }
  0x31   : > { %1972 = dma.done.wait (%p69_p1), [#allocation8], 2048  }
  0x32   : > { %1974 = vsyncadd (%p69_p1), [#allocation8], 4294965248  ;;  %s1481_s10 = sshll.u32 %s2060_s28, 4  ;;  %v1998_v0 = vmov 0   ;;  %v1688_v7 = vld [vmem:[#allocation4 + $0x38] sm:$0xff]  ;;  %v1687_v8 = vld [vmem:[#allocation4 + $0x30] sm:$0xff]  ;;  %v442_v25 = vlaneseq }
  0x33   : > { %1823 = vset.pattern.permute.xlu1 %v1998_v0  ;;  %1822 = vset.pattern.permute.xlu0 %v1998_v0  ;;  %p378_p5 = scmp.lt.s32.totalorder %s1481_s10, 63  ;;  %v1686_v12 = vld [vmem:[#allocation4 + $0x28] sm:$0xff]  ;;  %v1685_v13 = vld [vmem:[#allocation4 + $0x20] sm:$0xff]  ;;  %v1684_v17 = vld [vmem:[#allocation4 + $0x18] sm:$0xff]  ;;  %v1999_v29 = vmov 1.0|1.0  }
  0x34   : > { %1824 = vset.pattern.permute.xlu2 %v1998_v0  ;;  %1721 = vmatpush.bf16.msra.mxu1 %v1688_v7  ;;  %v1683_v18 = vld [vmem:[#allocation4 + $0x10] sm:$0xff]  ;;  %v1682_v23 = vld [vmem:[#allocation4 + $0x8] sm:$0xff]  ;;  %v1681_v24 = vld [vmem:[#allocation4] sm:$0xff]  ;;  %v2181_v27 = vand.u32 127, %v442_v25  ;;  %v2000_v36 = vmov 0.0   ;;  %p390_p1 = scmp.lt.s32.totalorder %s2060_s28, 3 }
  0x35   : > { %s2466_s10 = smov (!%p378_p5, %s1481_s10), 63  ;;  %760 = vmatpush.bf16.msra.mxu0 %v1688_v7  ;;  %1722 = vmatpush.bf16.msra.mxu2 %v1688_v7  ;;  %v2195_v31 = vld [vmem:[%s2453_s4 + $0x1] ss:$0 sm:$0xff]  ;;  %v2200_v32 = vld [vmem:[%s2453_s4] ss:$0 sm:$0xff] }
  0x36   : > { %s1482_s29 = sshll.u32 %s2466_s10, 3  ;;  %1723 = vmatpush.bf16.msra.mxu3 %v1688_v7  ;;  %s2468_s28 = smov (!%p390_p1, %s2060_s28), 3 }
  0x37   : > { %s2163_s18 = scalar_lea.vmem %s2451_s2, %s1482_s29  ;;  %s2333_s20 = scalar_lea.vmem %s2449_s0, %s1482_s29 }
  0x38   : > { %v428_v1 = vld [vmem:[%s2163_s18 + $0x10] sm:$0xff]  ;;  %v426_v2 = vld [vmem:[%s2163_s18] sm:$0xff]  ;;  %v429_v4 = vld [vmem:[%s2163_s18 + $0x18] sm:$0xff]  ;;  %1724 = vmatpush.bf16.msra.mxu1 %v1687_v8  ;;  %s1485_s23 = sshll.u32 %s2468_s28, 3 }
  0x39   : > { %451 = vperm.xlu1 %1823, %v428_v1   ;;  %445 = vperm.xlu0 %1822, %v426_v2   ;;  %v430_v3 = vld [vmem:[%s2163_s18 + $0x20] sm:$0xff]  ;;  %v427_v5 = vld [vmem:[%s2163_s18 + $0x8] sm:$0xff]  ;;  %v433_v9 = vld [vmem:[%s2163_s18 + $0x38] sm:$0xff]  ;;  %s393_s13 = scalar_lea.vmem %s2456_s7, %s1485_s23 }
  0x3a   : > { %457 = vperm.xlu2 %1824, %v430_v3   ;;  %v431_v6 = vld [vmem:[%s2163_s18 + $0x28] sm:$0xff]  ;;  %v432_v10 = vld [vmem:[%s2163_s18 + $0x30] sm:$0xff]  ;;  %v434_v11 = vld [vmem:[%s2163_s18 + $0x40] sm:$0xff]  ;;  %761 = vmatpush.bf16.msra.mxu0 %v1687_v8 }
  0x3b   : > { %1725 = vmatpush.bf16.msra.mxu2 %v1687_v8  ;;  %1726 = vmatpush.bf16.msra.mxu3 %v1687_v8  ;;  %v436_v14 = vld [vmem:[%s2163_s18 + $0x50] sm:$0xff]  ;;  %v435_v15 = vld [vmem:[%s2163_s18 + $0x48] sm:$0xff]  ;;  %v437_v16 = vld [vmem:[%s2163_s18 + $0x58] sm:$0xff] }
  0x3c   : > { %1727 = vmatpush.bf16.msra.mxu1 %v1686_v12  ;;  %v439_v19 = vld [vmem:[%s2163_s18 + $0x68] sm:$0xff]  ;;  %v438_v20 = vld [vmem:[%s2163_s18 + $0x60] sm:$0xff]  ;;  %v440_v21 = vld [vmem:[%s2163_s18 + $0x70] sm:$0xff] }
  0x3d   : > { %v441_v22 = vld [vmem:[%s2163_s18 + $0x78] sm:$0xff] }
  0x3e   : > { %762 = vmatpush.bf16.msra.mxu0 %v1686_v12 }
  0x3f   : > { %1728 = vmatpush.bf16.msra.mxu2 %v1686_v12  ;;  %1729 = vmatpush.bf16.msra.mxu3 %v1686_v12 }
  0x40   : > { %1730 = vmatpush.bf16.msra.mxu1 %v1685_v13 }
  0x41   : > { %454 = vperm.xlu1 %1823, %v429_v4   ;;  %448 = vperm.xlu0 %1822, %v427_v5  }
  0x42   : > { %460 = vperm.xlu2 %1824, %v431_v6   ;;  %763 = vmatpush.bf16.msra.mxu0 %v1685_v13 }
  0x43   : > { %1731 = vmatpush.bf16.msra.mxu2 %v1685_v13  ;;  %1732 = vmatpush.bf16.msra.mxu3 %v1685_v13 }
  0x44   : > { %1733 = vmatpush.bf16.msra.mxu1 %v1684_v17 }
  0x46   : > { %764 = vmatpush.bf16.msra.mxu0 %v1684_v17 }
  0x47   : > { %1734 = vmatpush.bf16.msra.mxu2 %v1684_v17  ;;  %1735 = vmatpush.bf16.msra.mxu3 %v1684_v17 }
  0x48   : > { %1736 = vmatpush.bf16.msra.mxu1 %v1683_v18 }
  0x49   : > { %466 = vperm.xlu1 %1823, %v433_v9   ;;  %463 = vperm.xlu0 %1822, %v432_v10  }
  0x4a   : > { %469 = vperm.xlu2 %1824, %v434_v11   ;;  %765 = vmatpush.bf16.msra.mxu0 %v1683_v18 }
  0x4b   : > { %1737 = vmatpush.bf16.msra.mxu2 %v1683_v18  ;;  %1738 = vmatpush.bf16.msra.mxu3 %v1683_v18 }
  0x4c   : > { %1739 = vmatpush.bf16.msra.mxu1 %v1682_v23 }
  0x4e   : > { %766 = vmatpush.bf16.msra.mxu0 %v1682_v23 }
  0x4f   : > { %1740 = vmatpush.bf16.msra.mxu2 %v1682_v23  ;;  %1741 = vmatpush.bf16.msra.mxu3 %v1682_v23 }
  0x50   : > { %1742 = vmatpush.bf16.msra.mxu1 %v1681_v24 }
  0x51   : > { %475 = vperm.xlu1 %1823, %v436_v14   ;;  %472 = vperm.xlu0 %1822, %v435_v15  }
  0x52   : > { %478 = vperm.xlu2 %1824, %v437_v16   ;;  %767 = vmatpush.bf16.msra.mxu0 %v1681_v24 }
  0x53   : > { %1743 = vmatpush.bf16.msra.mxu2 %v1681_v24  ;;  %1744 = vmatpush.bf16.msra.mxu3 %v1681_v24 }
  0x59   : > { %484 = vperm.xlu1 %1823, %v439_v19   ;;  %481 = vperm.xlu0 %1822, %v438_v20  }
  0x5a   : > { %487 = vperm.xlu2 %1824, %v440_v21  }
  0x61   : > { %490 = vperm.xlu0 %1822, %v441_v22  }
  0x94   : > { %v458_v26 = vpop.permute.xlu2 %457 }
  0x95   : > { %vm496_vm0 = vcmp.eq.s32.totalorder %v458_v26, %v2181_v27 }
  0x96   : > { %v1490_v58 = vsel %vm496_vm0, 1.0, %v2000_v36 }
  0x97   : > { %v596_v62 = vmul.f32 %v2195_v31, %v1490_v58  ;;  %v546_v5 = vmul.f32 %v2200_v32, %v1490_v58  ;;  %v1695_v58 = vld [vmem:[#allocation6 + $0x34] sm:$0xf] }
  0x9c   : > { %v461_v28 = vpop.permute.xlu2 %460 }
  0x9d   : > { %vm497_vm1 = vcmp.eq.s32.totalorder %v461_v28, %v2181_v27 }
  0x9e   : > { %vm1538_vm2 = vmpackc.low %vm497_vm1, %vm496_vm0  ;;  %v1491_v51 = vsel %vm497_vm1, 1.0, %v2000_v36 }
  0x9f   : > { %1539 = vmatmul.msk.bf16.vlgmr.msra.gmra.mxu1 %vm1538_vm2, %v1999_v29  ;;  %v547_v55 = vmul.f32 %v2200_v32, %v1491_v51  ;;  %v597_v17 = vmul.f32 %v2195_v31, %v1491_v51 }
  0xa4   : > { %v2190_v30 = vpop.permute.xlu2 %469 }
  0xa5   : > { %vm500_vm12 = vcmp.eq.s32.totalorder %v2190_v30, %v2181_v27  ;;  %v1704_v30 = vld [vmem:[#allocation6 + $0x74] sm:$0xf0] }
  0xa6   : > { %v1494_v10 = vsel %vm500_vm12, 1.0, %v2000_v36 }
  0xa7   : > { %v550_v13 = vmul.f32 %v2200_v32, %v1494_v10  ;;  %v600_v14 = vmul.f32 %v2195_v31, %v1494_v10  ;;  %v1690_v10 = vld [vmem:[#allocation6 + $0x4] sm:$0xf0] }
  0xab   : > { %v452_v33 = vpop.permute.xlu1 %451  ;;  %v446_v34 = vpop.permute.xlu0 %445 }
  0xac   : > { %vm492_vm3 = vcmp.eq.s32.totalorder %v446_v34, %v2181_v27  ;;  %v2203_v35 = vpop.permute.xlu2 %478  ;;  %vm494_vm4 = vcmp.eq.s32.totalorder %v452_v33, %v2181_v27  ;;  %v1703_v33 = vld [vmem:[#allocation6 + $0x74] sm:$0xf] }
  0xad   : > { %v1486_v37 = vsel %vm492_vm3, 1.0, %v2000_v36  ;;  %v1488_v40 = vsel %vm494_vm4, 1.0, %v2000_v36 }
  0xae   : > { %v592_v38 = vmul.f32 %v2195_v31, %v1486_v37  ;;  %v542_v39 = vmul.f32 %v2200_v32, %v1486_v37  ;;  %v594_v43 = vmul.f32 %v2195_v31, %v1488_v40  ;;  %v544_v44 = vmul.f32 %v2200_v32, %v1488_v40  ;;  %v1702_v40 = vld [vmem:[#allocation6 + $0x64] sm:$0xf0] }
  0xb0   : > { %608 = vadd.xlane.f32.xlu0 %v592_v38  ;;  %558 = vadd.xlane.f32.xlu1 %v542_v39  ;;  %v1600_v39 = vld [vmem:[#allocation6 + $0x60] sm:$0xf] }
  0xb3   : > { %v455_v41 = vpop.permute.xlu1 %454  ;;  %v449_v42 = vpop.permute.xlu0 %448 }
  0xb4   : > { %vm493_vm5 = vcmp.eq.s32.totalorder %v449_v42, %v2181_v27  ;;  %v2217_v45 = vpop.permute.xlu2 %487  ;;  %vm495_vm7 = vcmp.eq.s32.totalorder %v455_v41, %v2181_v27  ;;  %v1601_v41 = vor.u32 %v1702_v40, %v1600_v39  ;;  %v1701_v42 = vld [vmem:[#allocation6 + $0x64] sm:$0xf]  ;;  %v2347_v40 = vld [vmem:[%s2140_s27 + $0x10] sm:$0xff] }
  0xb5   : > { %v1487_v46 = vsel %vm493_vm5, 1.0, %v2000_v36  ;;  %vm506_vm6 = vcmp.eq.s32.totalorder %v2217_v45, %v2181_v27  ;;  %vm1534_vm8 = vmpackc.low %vm493_vm5, %vm492_vm3  ;;  %v1489_v52 = vsel %vm495_vm7, 1.0, %v2000_v36  ;;  %vm503_vm3 = vcmp.eq.s32.totalorder %v2203_v35, %v2181_v27  ;;  %v1610_v35 = vld [vmem:[#allocation6 + $0x78] sm:$0xf0]  ;;  %v1700_v45 = vld [vmem:[#allocation6 + $0x54] sm:$0xf0] }
  0xb6   : > { %v543_v47 = vmul.f32 %v2200_v32, %v1487_v46  ;;  %1535 = vmatmul.msk.bf16.vlgmr.msra.gmra.mxu0 %vm1534_vm8, %v1999_v29  ;;  %v1500_v48 = vsel %vm506_vm6, 1.0, %v2000_v36  ;;  %v595_v56 = vmul.f32 %v2195_v31, %v1489_v52  ;;  %v593_v57 = vmul.f32 %v2195_v31, %v1487_v46  ;;  %vm1536_vm14 = vmpackc.low %vm495_vm7, %vm494_vm4  ;;  %v1699_v46 = vld [vmem:[#allocation6 + $0x54] sm:$0xf] }
  0xb7   : > { %v2232_v49 = vmul.f32 %v2200_v32, %v1500_v48  ;;  %v2235_v50 = vmul.f32 %v2195_v31, %v1500_v48  ;;  %v545_v0 = vmul.f32 %v2200_v32, %v1489_v52  ;;  %v1497_v18 = vsel %vm503_vm3, 1.0, %v2000_v36  ;;  %v1594_v48 = vld [vmem:[#allocation6 + $0x58] sm:$0xf0]  ;;  %v1697_v52 = vld [vmem:[#allocation6 + $0x44] sm:$0xf] }
  0xb8   : > { %612 = vadd.xlane.f32.xlu0 %v594_v43  ;;  %562 = vadd.xlane.f32.xlu1 %v544_v44  ;;  %v553_v20 = vmul.f32 %v2200_v32, %v1497_v18  ;;  %v1613_v37 = vor.u32 %v1703_v33, %v1610_v35  ;;  %v1602_v43 = vld [vmem:[#allocation6 + $0x68] sm:$0xf0]  ;;  %v1592_v44 = vld [vmem:[#allocation6 + $0x50] sm:$0xf] }
  0xb9   : > { %560 = vadd.xlane.f32.xlu2 %v543_v47  ;;  %v1593_v47 = vor.u32 %v1700_v45, %v1592_v44 }
  0xba   : > { %978 = vmatpush.bf16.msrb.mxu2 %v1613_v37 }
  0xbb   : > { %v467_v53 = vpop.permute.xlu1 %466  ;;  %v464_v54 = vpop.permute.xlu0 %463 }
  0xbc   : > { %vm499_vm9 = vcmp.eq.s32.totalorder %v467_v53, %v2181_v27  ;;  %vm498_vm10 = vcmp.eq.s32.totalorder %v464_v54, %v2181_v27  ;;  %v1586_v53 = vld [vmem:[#allocation6 + $0x48] sm:$0xf0] }
  0xbd   : > { %vm1540_vm11 = vmpackc.low %vm499_vm9, %vm498_vm10  ;;  %v1492_v59 = vsel %vm498_vm10, 1.0, %v2000_v36  ;;  %v1493_v1 = vsel %vm499_vm9, 1.0, %v2000_v36  ;;  %v1589_v54 = vor.u32 %v1697_v52, %v1586_v53 }
  0xbe   : > { %1541 = vmatmul.msk.bf16.gmra.mxu1 %vm1540_vm11, %v1999_v29  ;;  %v548_v63 = vmul.f32 %v2200_v32, %v1492_v59  ;;  %v549_v6 = vmul.f32 %v2200_v32, %v1493_v1  ;;  %v599_v7 = vmul.f32 %v2195_v31, %v1493_v1  ;;  %v598_v22 = vmul.f32 %v2195_v31, %v1492_v59  ;;  %v1578_v59 = vld [vmem:[#allocation6 + $0x38] sm:$0xf0]  ;;  %v1570_v1 = vld [vmem:[#allocation6 + $0x28] sm:$0xf0] }
  0xc0   : > { %568 = vadd.xlane.f32.xlu0 %v547_v55  ;;  %614 = vadd.xlane.f32.xlu1 %v595_v56  ;;  %v1576_v55 = vld [vmem:[#allocation6 + $0x30] sm:$0xf]  ;;  %v1696_v56 = vld [vmem:[#allocation6 + $0x34] sm:$0xf0] }
  0xc1   : > { %610 = vadd.xlane.f32.xlu2 %v593_v57  ;;  %v1577_v57 = vor.u32 %v1696_v56, %v1576_v55 }
  0xc3   : > { %v476_v60 = vpop.permute.xlu1 %475  ;;  %v473_v61 = vpop.permute.xlu0 %472 }
  0xc4   : > { %vm501_vm13 = vcmp.eq.s32.totalorder %v473_v61, %v2181_v27  ;;  %vm502_vm4 = vcmp.eq.s32.totalorder %v476_v60, %v2181_v27  ;;  %v1581_v60 = vor.u32 %v1695_v58, %v1578_v59  ;;  %v1568_v61 = vld [vmem:[#allocation6 + $0x20] sm:$0xf]  ;;  %v399_v58 = vld [vmem:[%s2333_s20 + $0x28] sm:$0xff] }
  0xc5   : > { %vm1542_vm15 = vmpackc.low %vm501_vm13, %vm500_vm12  ;;  %v1495_v19 = vsel %vm501_vm13, 1.0, %v2000_v36  ;;  %v1496_v23 = vsel %vm502_vm4, 1.0, %v2000_v36  ;;  %v2360_v59 = vld [vmem:[%s2140_s27 + $0x20] sm:$0xff] }
  0xc6   : > { %1537 = vmatmul.msk.bf16.gmra.mxu0 %vm1536_vm14, %v1999_v29  ;;  %1543 = vmatmul.msk.bf16.vlgmr.msra.gmra.mxu2 %vm1542_vm15, %v1999_v29  ;;  %vm1544_vm7 = vmpackc.low %vm503_vm3, %vm502_vm4  ;;  %v601_v21 = vmul.f32 %v2195_v31, %v1495_v19  ;;  %v602_v25 = vmul.f32 %v2195_v31, %v1496_v23  ;;  %v551_v28 = vmul.f32 %v2200_v32, %v1495_v19  ;;  %v2337_v19 = vld [vmem:[%s2140_s27] sm:$0xff] }
  0xc8   : > { %616 = vadd.xlane.f32.xlu1 %v596_v62  ;;  %570 = vadd.xlane.f32.xlu0 %v548_v63  ;;  %v1694_v62 = vld [vmem:[#allocation6 + $0x24] sm:$0xf0] }
  0xc9   : > { %564 = vadd.xlane.f32.xlu2 %v545_v0  ;;  %v1569_v63 = vor.u32 %v1694_v62, %v1568_v61  ;;  %v1693_v0 = vld [vmem:[#allocation6 + $0x24] sm:$0xf] }
  0xcb   : > { %v485_v2 = vpop.permute.xlu1 %484  ;;  %v482_v3 = vpop.permute.xlu0 %481 }
  0xcc   : > { %vm505_vm0 = vcmp.eq.s32.totalorder %v485_v2, %v2181_v27  ;;  %vm504_vm1 = vcmp.eq.s32.totalorder %v482_v3, %v2181_v27  ;;  %v1573_v2 = vor.u32 %v1693_v0, %v1570_v1  ;;  %v1560_v3 = vld [vmem:[#allocation6 + $0x10] sm:$0xf] }
  0xcd   : > { %v1499_v4 = vsel %vm505_vm0, 1.0, %v2000_v36  ;;  %vm1546_vm2 = vmpackc.low %vm505_vm0, %vm504_vm1  ;;  %v1498_v24 = vsel %vm504_vm1, 1.0, %v2000_v36 }
  0xce   : > { %1547 = vmatmul.msk.bf16.vlgmr.msra.gmra.mxu3 %vm1546_vm2, %v1999_v29  ;;  %v555_v8 = vmul.f32 %v2200_v32, %v1499_v4  ;;  %v605_v9 = vmul.f32 %v2195_v31, %v1499_v4  ;;  %v554_v26 = vmul.f32 %v2200_v32, %v1498_v24  ;;  %v604_v38 = vmul.f32 %v2195_v31, %v1498_v24  ;;  %v1692_v4 = vld [vmem:[#allocation6 + $0x14] sm:$0xf0] }
  0xd0   : > { %572 = vadd.xlane.f32.xlu1 %v549_v6  ;;  %622 = vadd.xlane.f32.xlu0 %v599_v7  ;;  %v1691_v6 = vld [vmem:[#allocation6 + $0x14] sm:$0xf]  ;;  %v1562_v7 = vld [vmem:[#allocation6 + $0x18] sm:$0xf0] }
  0xd1   : > { %566 = vadd.xlane.f32.xlu2 %v546_v5  ;;  %v1561_v5 = vor.u32 %v1692_v4, %v1560_v3 }
  0xd3   : > { %v491_v11 = vpop.permute.xlu0 %490 }
  0xd4   : > { %vm507_vm5 = vcmp.eq.s32.totalorder %v491_v11, %v2181_v27  ;;  %v552_v27 = vmul.f32 %v2200_v32, %v1496_v23  ;;  %v395_v23 = vld [vmem:[%s2333_s20 + $0x8] sm:$0xff] }
  0xd5   : > { %v1501_v12 = vsel %vm507_vm5, 1.0, %v2000_v36  ;;  %vm1548_vm8 = vmpackc.low %vm507_vm5, %vm506_vm6  ;;  %v603_v36 = vmul.f32 %v2195_v31, %v1497_v18  ;;  %v394_v18 = vld [vmem:[%s2333_s20] sm:$0xff] }
  0xd6   : > { %v607_v15 = vmul.f32 %v2195_v31, %v1501_v12  ;;  %v557_v16 = vmul.f32 %v2200_v32, %v1501_v12  ;;  %1545 = vmatmul.msk.bf16.gmra.mxu2 %vm1544_vm7, %v1999_v29  ;;  %v1605_v32 = vor.u32 %v1701_v42, %v1602_v43  ;;  %v1584_v31 = vld [vmem:[#allocation6 + $0x40] sm:$0xf]  ;;  %v1689_v12 = vld [vmem:[#allocation6 + $0x4] sm:$0xf] }
  0xd8   : > { %574 = vadd.xlane.f32.xlu1 %v550_v13  ;;  %624 = vadd.xlane.f32.xlu0 %v600_v14  ;;  %v1554_v13 = vld [vmem:[#allocation6 + $0x8] sm:$0xf0] }
  0xd9   : > { %618 = vadd.xlane.f32.xlu2 %v597_v17  ;;  %979 = vmatpush.bf16.msrb.mxu2 %v1605_v32  ;;  %v1557_v14 = vor.u32 %v1689_v12, %v1554_v13  ;;  %v2351_v32 = vld [vmem:[%s2140_s27 + $0x18] sm:$0xff]  ;;  %v400_v13 = vld [vmem:[%s2333_s20 + $0x30] sm:$0xff] }
  0xde   : > { %1549 = vmatmul.msk.bf16.gmra.mxu3 %vm1548_vm8, %v1999_v29  ;;  %v1608_v29 = vld [vmem:[#allocation6 + $0x70] sm:$0xf] }
  0xdf   : > { %v1609_v34 = vor.u32 %v1704_v30, %v1608_v29 }
  0xe0   : > { %580 = vadd.xlane.f32.xlu0 %v553_v20  ;;  %626 = vadd.xlane.f32.xlu1 %v601_v21 }
  0xe1   : > { %620 = vadd.xlane.f32.xlu2 %v598_v22  ;;  %929 = vmatpush.bf16.msrb.mxu1 %v1609_v34  ;;  %v2340_v22 = vld [vmem:[%s2140_s27 + $0x8] sm:$0xff] }
  0xe5   : > { %930 = vmatpush.bf16.msrb.mxu1 %v1601_v41  ;;  %v397_v41 = vld [vmem:[%s2333_s20 + $0x18] sm:$0xff] }
  0xe8   : > { %628 = vadd.xlane.f32.xlu1 %v602_v25  ;;  %582 = vadd.xlane.f32.xlu0 %v554_v26 }
  0xe9   : > { %576 = vadd.xlane.f32.xlu2 %v551_v28  ;;  %931 = vmatpush.bf16.msrb.mxu1 %v1593_v47 }
  0xf0   : > { %584 = vadd.xlane.f32.xlu1 %v555_v8  ;;  %634 = vadd.xlane.f32.xlu0 %v605_v9  ;;  %v1565_v8 = vor.u32 %v1691_v6, %v1562_v7  ;;  %v1552_v9 = vld [vmem:[#allocation6] sm:$0xf] }
  0xf1   : > { %578 = vadd.xlane.f32.xlu2 %v552_v27  ;;  %v1553_v11 = vor.u32 %v1690_v10, %v1552_v9 }
  0xf8   : > { %586 = vadd.xlane.f32.xlu1 %v2232_v49  ;;  %636 = vadd.xlane.f32.xlu0 %v2235_v50  ;;  %v1597_v49 = vor.u32 %v1699_v46, %v1594_v48  ;;  %v1698_v50 = vld [vmem:[#allocation6 + $0x44] sm:$0xf0] }
  0xf9   : > { %630 = vadd.xlane.f32.xlu2 %v603_v36  ;;  %v1585_v51 = vor.u32 %v1698_v50, %v1584_v31 }
  0xfa   : > { %980 = vmatpush.bf16.msrb.mxu2 %v1597_v49 }
  0xfb   : > { %932 = vmatpush.bf16.msrb.mxu1 %v1585_v51 }
  0xfe   : > { %981 = vmatpush.bf16.msrb.mxu2 %v1589_v54 }
  0xff   : > { %933 = vmatpush.bf16.msrb.mxu1 %v1577_v57  ;;  %v2356_v57 = vld [vmem:[%s2140_s27 + $0x28] sm:$0xff] }
 0x100   : > { %638 = vadd.xlane.f32.xlu1 %v607_v15 }
 0x101   : > { %632 = vadd.xlane.f32.xlu2 %v604_v38  ;;  %v396_v38 = vld [vmem:[%s2333_s20 + $0x10] sm:$0xff] }
 0x102   : > { %982 = vmatpush.bf16.msrb.mxu2 %v1581_v60  ;;  %v398_v60 = vld [vmem:[%s2333_s20 + $0x20] sm:$0xff] }
 0x103   : > { %934 = vmatpush.bf16.msrb.mxu1 %v1569_v63 }
 0x106   : > { %983 = vmatpush.bf16.msrb.mxu2 %v1573_v2 }
 0x107   : > { %935 = vmatpush.bf16.msrb.mxu1 %v1561_v5 }
 0x109   : > { %588 = vadd.xlane.f32.xlu2 %v557_v16 }
 0x10a   : > { %984 = vmatpush.bf16.msrb.mxu2 %v1565_v8 }
 0x10b   : > { %936 = vmatpush.bf16.msrb.mxu1 %v1553_v11  ;;  %v2366_v11 = vld [vmem:[%s2140_s27 + $0x30] sm:$0xff] }
 0x10e   : > { %985 = vmatpush.bf16.msrb.mxu2 %v1557_v14  ;;  %v401_v14 = vld [vmem:[%s2333_s20 + $0x38] sm:$0xff] }
 0x11c   : > { %v779_v51 = vpop.f32.mrf.mxu1 }
 0x123   : > { %v559_v16 = vpop.xlane.xlu1 %558  ;;  %v609_v17 = vpop.xlane.xlu0 %608 }
 0x124   : > { %v640_v24 = vmul.f32 %v559_v16, %v394_v18  ;;  %v656_v25 = vmul.f32 %v609_v17, %v2337_v19  ;;  %v781_v2 = vpop.f32.mrf.mxu1  ;;  %v2371_v16 = vld [vmem:[%s2140_s27 + $0x38] sm:$0xff] }
 0x126   : > { %v672_v30 = vadd.f32 %v656_v25, %v640_v24 }
 0x12b   : > { %v563_v29 = vpop.xlane.xlu1 %562  ;;  %v613_v39 = vpop.xlane.xlu0 %612 }
 0x12c   : > { %v561_v15 = vpop.xlane.xlu2 %560  ;;  %v642_v45 = vmul.f32 %v563_v29, %v396_v38  ;;  %v658_v46 = vmul.f32 %v613_v39, %v2347_v40  ;;  %v2381_v39 = vld [vmem:[%s2140_s27 + $0x48] sm:$0xff] }
 0x12d   : > { %v641_v28 = vmul.f32 %v561_v15, %v395_v23 }
 0x12e   : > { %v674_v49 = vadd.f32 %v658_v46, %v642_v45 }
 0x133   : > { %v769_v20 = vpop.f32.mrf.mxu0  ;;  %v615_v43 = vpop.xlane.xlu1 %614 }
 0x134   : > { %v611_v21 = vpop.xlane.xlu2 %610  ;;  %v809_v37 = vadd.f32 %v769_v20, %v672_v30  ;;  %v659_v48 = vmul.f32 %v615_v43, %v2351_v32  ;;  %v569_v54 = vpop.xlane.xlu0 %568 }
 0x135   : > { %v657_v26 = vmul.f32 %v611_v21, %v2340_v22  ;;  %v645_v63 = vmul.f32 %v569_v54, %v399_v58  ;;  %v2386_v54 = vld [vmem:[%s2140_s27 + $0x58] sm:$0xff]  ;;  %v404_v58 = vld [vmem:[%s2333_s20 + $0x50] sm:$0xff] }
 0x137   : > { %v673_v33 = vadd.f32 %v657_v26, %v641_v28 }
 0x13b   : > { %v771_v34 = vpop.f32.mrf.mxu0  ;;  %v617_v62 = vpop.xlane.xlu1 %616 }
 0x13c   : > { %v565_v35 = vpop.xlane.xlu2 %564  ;;  %v810_v27 = vadd.f32 %v771_v34, %v673_v33  ;;  %v660_v0 = vmul.f32 %v617_v62, %v2360_v59  ;;  %v571_v4 = vpop.xlane.xlu0 %570 }
 0x13d   : > { %v643_v47 = vmul.f32 %v565_v35, %v397_v41  ;;  %v784_v12 = vpop.f32.mrf.mxu1  ;;  %v646_v18 = vmul.f32 %v571_v4, %v400_v13  ;;  %v403_v35 = vld [vmem:[%s2333_s20 + $0x48] sm:$0xff] }
 0x13e   : > { %v825_v36 = vpack.c.bf16 %v810_v27, %v809_v37  ;;  %v402_v37 = vld [vmem:[%s2333_s20 + $0x40] sm:$0xff] }
 0x13f   : > { %v675_v31 = vadd.f32 %v659_v48, %v643_v47 }
 0x140   : > { %937 = vmatmul.bf16.vlgmr.msrb.gmra.mxu1 %v825_v36  ;;  %986 = vmatmul.bf16.vlgmr.msrb.gmra.mxu2 %v825_v36  ;;  %v2378_v36 = vld [vmem:[%s2140_s27 + $0x40] sm:$0xff] }
 0x143   : > { %v774_v42 = vpop.f32.mrf.mxu0  ;;  %v573_v8 = vpop.xlane.xlu1 %572 }
 0x144   : > { %v567_v44 = vpop.xlane.xlu2 %566  ;;  %v811_v52 = vadd.f32 %v774_v42, %v674_v49  ;;  %v623_v15 = vpop.xlane.xlu0 %622  ;;  %v647_v20 = vmul.f32 %v573_v8, %v401_v14  ;;  %v2396_v14 = vld [vmem:[%s2140_s27 + $0x60] sm:$0xff] }
 0x145   : > { %v644_v1 = vmul.f32 %v567_v44, %v398_v60  ;;  %v663_v21 = vmul.f32 %v623_v15, %v2371_v16  ;;  %v786_v26 = vpop.f32.mrf.mxu1  ;;  %v1720_v15 = vld [vmem:[#allocation7 + $0x78] sm:$0xff] }
 0x146   : > { %1252 = vmatpush.bf16.msrb.mxu0 %v1720_v15 }
 0x147   : > { %v676_v5 = vadd.f32 %v660_v0, %v644_v1  ;;  %v679_v25 = vadd.f32 %v663_v21, %v647_v20  ;;  %v407_v20 = vld [vmem:[%s2333_s20 + $0x68] sm:$0xff] }
 0x149   : > { %v813_v7 = vadd.f32 %v779_v51, %v676_v5  ;;  %v789_v29 = vpop.f32.mrf.mxu2  ;;  %v816_v33 = vadd.f32 %v786_v26, %v679_v25  ;;  %v1719_v25 = vld [vmem:[#allocation7 + $0x70] sm:$0xff]  ;;  %v1709_v26 = vld [vmem:[#allocation7 + $0x20] sm:$0xff] }
 0x14a   : > { %1253 = vmatpush.bf16.msrb.mxu0 %v1719_v25 }
 0x14b   : > { %v776_v50 = vpop.f32.mrf.mxu0  ;;  %v575_v24 = vpop.xlane.xlu1 %574 }
 0x14c   : > { %v812_v53 = vadd.f32 %v776_v50, %v675_v31  ;;  %v619_v56 = vpop.xlane.xlu2 %618  ;;  %v625_v27 = vpop.xlane.xlu0 %624  ;;  %v648_v42 = vmul.f32 %v575_v24, %v402_v37  ;;  %v1708_v37 = vld [vmem:[#allocation7 + $0x18] sm:$0xff] }
 0x14d   : > { %v661_v61 = vmul.f32 %v619_v56, %v2356_v57  ;;  %v664_v43 = vmul.f32 %v625_v27, %v2378_v36  ;;  %v405_v56 = vld [vmem:[%s2333_s20 + $0x58] sm:$0xff] }
 0x14e   : > { %v826_v55 = vpack.c.bf16 %v812_v53, %v811_v52 }
 0x14f   : > { %v677_v3 = vadd.f32 %v661_v61, %v645_v63  ;;  %v680_v48 = vadd.f32 %v664_v43, %v648_v42  ;;  %v1711_v61 = vld [vmem:[#allocation7 + $0x30] sm:$0xff]  ;;  %v1717_v42 = vld [vmem:[#allocation7 + $0x60] sm:$0xff] }
 0x150   : > { %942 = vmatmul.bf16.gmra.mxu1 %v826_v55  ;;  %991 = vmatmul.bf16.gmra.mxu2 %v826_v55  ;;  %v1712_v55 = vld [vmem:[#allocation7 + $0x38] sm:$0xff]  ;;  %v2392_v63 = vld [vmem:[%s2140_s27 + $0x50] sm:$0xff] }
 0x151   : > { %v814_v6 = vadd.f32 %v781_v2, %v677_v3  ;;  %v791_v45 = vpop.f32.mrf.mxu2  ;;  %v817_v31 = vadd.f32 %v789_v29, %v680_v48  ;;  %1203 = vmatpush.bf16.msrb.mxu3 %v1712_v55  ;;  %v799_v8 = vpop.f32.mrf.mxu3  ;;  %v1706_v55 = vld [vmem:[#allocation7 + $0x8] sm:$0xff] }
 0x153   : > { %v827_v9 = vpack.c.bf16 %v814_v6, %v813_v7  ;;  %v627_v38 = vpop.xlane.xlu1 %626 }
 0x154   : > { %v621_v10 = vpop.xlane.xlu2 %620  ;;  %v665_v44 = vmul.f32 %v627_v38, %v2381_v39  ;;  %v581_v50 = vpop.xlane.xlu0 %580 }
 0x155   : > { %v662_v17 = vmul.f32 %v621_v10, %v2366_v11  ;;  %v651_v0 = vmul.f32 %v581_v50, %v405_v56  ;;  %1204 = vmatpush.bf16.msrb.mxu3 %v1711_v61 }
 0x157   : > { %v678_v23 = vadd.f32 %v662_v17, %v646_v18  ;;  %v1710_v17 = vld [vmem:[#allocation7 + $0x28] sm:$0xff]  ;;  %v406_v18 = vld [vmem:[%s2333_s20 + $0x60] sm:$0xff] }
 0x159   : > { %v815_v28 = vadd.f32 %v784_v12, %v678_v23  ;;  %v794_v52 = vpop.f32.mrf.mxu2  ;;  %v2401_v23 = vld [vmem:[%s2140_s27 + $0x68] sm:$0xff]  ;;  %1205 = vmatpush.bf16.msrb.mxu3 %v1710_v17 }
 0x15b   : > { %v828_v34 = vpack.c.bf16 %v816_v33, %v815_v28  ;;  %v629_v62 = vpop.xlane.xlu1 %628  ;;  %v801_v33 = vpop.f32.mrf.mxu3 }
 0x15c   : > { %v577_v30 = vpop.xlane.xlu2 %576  ;;  %v666_v2 = vmul.f32 %v629_v62, %v2392_v63  ;;  %v583_v4 = vpop.xlane.xlu0 %582  ;;  %v1715_v62 = vld [vmem:[#allocation7 + $0x50] sm:$0xff] }
 0x15d   : > { %v649_v41 = vmul.f32 %v577_v30, %v403_v35  ;;  %v652_v28 = vmul.f32 %v583_v4, %v406_v18  ;;  %1206 = vmatpush.bf16.msrb.mxu3 %v1709_v26  ;;  %v1718_v35 = vld [vmem:[#allocation7 + $0x68] sm:$0xff] }
 0x15e   : > { %1254 = vmatpush.bf16.msrb.mxu0 %v1718_v35 }
 0x15f   : > { %v681_v47 = vadd.f32 %v665_v44, %v649_v41 }
 0x160   : > { %947 = vmatmul.bf16.gmra.mxu1 %v827_v9  ;;  %996 = vmatmul.bf16.gmra.mxu2 %v827_v9 }
 0x161   : > { %v818_v49 = vadd.f32 %v791_v45, %v681_v47  ;;  %v796_v6 = vpop.f32.mrf.mxu2  ;;  %1207 = vmatpush.bf16.msrb.mxu3 %v1708_v37  ;;  %v1707_v45 = vld [vmem:[#allocation7 + $0x10] sm:$0xff] }
 0x162   : > { %1255 = vmatpush.bf16.msrb.mxu0 %v1717_v42 }
 0x163   : > { %v829_v51 = vpack.c.bf16 %v818_v49, %v817_v31  ;;  %v585_v10 = vpop.xlane.xlu1 %584  ;;  %v804_v47 = vpop.f32.mrf.mxu3  ;;  %v409_v49 = vld [vmem:[%s2333_s20 + $0x78] sm:$0xff]  ;;  %v408_v31 = vld [vmem:[%s2333_s20 + $0x70] sm:$0xff] }
 0x164   : > { %v579_v46 = vpop.xlane.xlu2 %578  ;;  %v635_v21 = vpop.xlane.xlu0 %634  ;;  %v653_v29 = vmul.f32 %v585_v10, %v407_v20 }
 0x165   : > { %v650_v1 = vmul.f32 %v579_v46, %v404_v58  ;;  %v669_v30 = vmul.f32 %v635_v21, %v2401_v23  ;;  %v1716_v46 = vld [vmem:[#allocation7 + $0x58] sm:$0xff]  ;;  %1208 = vmatpush.bf16.msrb.mxu3 %v1707_v45 }
 0x166   : > { %1256 = vmatpush.bf16.msrb.mxu0 %v1716_v46 }
 0x167   : > { %v682_v5 = vadd.f32 %v666_v2, %v650_v1  ;;  %v685_v38 = vadd.f32 %v669_v30, %v653_v29  ;;  %v1705_v1 = vld [vmem:[#allocation7] sm:$0xff] }
 0x169   : > { %v819_v9 = vadd.f32 %v794_v52, %v682_v5  ;;  %v822_v43 = vadd.f32 %v801_v33, %v685_v38  ;;  %1209 = vmatpush.bf16.msrb.mxu3 %v1706_v55 }
 0x16a   : > { %1257 = vmatpush.bf16.msrb.mxu0 %v1715_v62 }
 0x16b   : > { %v587_v27 = vpop.xlane.xlu1 %586  ;;  %v806_v4 = vpop.f32.mrf.mxu3 }
 0x16c   : > { %v631_v53 = vpop.xlane.xlu2 %630  ;;  %v637_v50 = vpop.xlane.xlu0 %636  ;;  %v654_v58 = vmul.f32 %v587_v27, %v408_v31 }
 0x16d   : > { %v667_v60 = vmul.f32 %v631_v53, %v2386_v54  ;;  %v2411_v53 = vld [vmem:[%s2140_s27 + $0x78] sm:$0xff]  ;;  %1210 = vmatpush.bf16.msrb.mxu3 %v1705_v1 }
 0x16f   : > { %v683_v3 = vadd.f32 %v667_v60, %v651_v0 }
 0x170   : > { %952 = vmatmul.bf16.gmra.mxu1 %v828_v34  ;;  %1001 = vmatmul.bf16.gmra.mxu2 %v828_v34 }
 0x171   : > { %v820_v7 = vadd.f32 %v796_v6, %v683_v3  ;;  %v1714_v3 = vld [vmem:[#allocation7 + $0x48] sm:$0xff] }
 0x172   : > { %1258 = vmatpush.bf16.msrb.mxu0 %v1714_v3 }
 0x173   : > { %v830_v12 = vpack.c.bf16 %v820_v7, %v819_v9  ;;  %v639_v52 = vpop.xlane.xlu1 %638  ;;  %v1713_v7 = vld [vmem:[#allocation7 + $0x40] sm:$0xff] }
 0x174   : > { %v633_v13 = vpop.xlane.xlu2 %632  ;;  %v671_v61 = vmul.f32 %v639_v52, %v2411_v53 }
 0x175   : > { %v668_v24 = vmul.f32 %v633_v13, %v2396_v14 }
 0x176   : > { %1259 = vmatpush.bf16.msrb.mxu0 %v1713_v7 }
 0x177   : > { %v684_v34 = vadd.f32 %v668_v24, %v652_v28 }
 0x179   : > { %v821_v41 = vadd.f32 %v799_v8, %v684_v34 }
 0x17b   : > { %v831_v44 = vpack.c.bf16 %v822_v43, %v821_v41 }
 0x17c   : > { %v589_v48 = vpop.xlane.xlu2 %588 }
 0x17d   : > { %v655_v56 = vmul.f32 %v589_v48, %v409_v49 }
 0x17f   : > { %v687_v0 = vadd.f32 %v671_v61, %v655_v56 }
 0x180   : > { %957 = vmatmul.bf16.gmra.mxu1 %v829_v51  ;;  %1006 = vmatmul.bf16.gmra.mxu2 %v829_v51  ;;  %v2408_v51 = vld [vmem:[%s2140_s27 + $0x70] sm:$0xff] }
 0x181   : > { %v670_v60 = vmul.f32 %v637_v50, %v2408_v51  ;;  %v824_v5 = vadd.f32 %v806_v4, %v687_v0 }
 0x183   : > { %v686_v2 = vadd.f32 %v670_v60, %v654_v58 }
 0x185   : > { %v823_v6 = vadd.f32 %v804_v47, %v686_v2 }
 0x187   : > { %v832_v8 = vpack.c.bf16 %v824_v5, %v823_v6 }
 0x190   : > { %962 = vmatmul.bf16.gmra.mxu1 %v830_v12  ;;  %1011 = vmatmul.bf16.gmra.mxu2 %v830_v12 }
 0x1a0   : > { %967 = vmatmul.bf16.gmra.mxu1 %v831_v44  ;;  %1016 = vmatmul.bf16.gmra.mxu2 %v831_v44 }
 0x1b0   : > { %972 = vmatmul.bf16.gmra.mxu1 %v832_v8  ;;  %1021 = vmatmul.bf16.gmra.mxu2 %v832_v8 }
 0x1bd   : > { %v938_v9 = vpop.f32.mrf.mxu1 }
 0x1be   : > { %v1027_v13 = vmax.f32 %v938_v9, 0.0 }
 0x1c3   : > { %v987_v10 = vpop.f32.mrf.mxu2 }
 0x1c4   : > { %v1028_v20 = vmax.f32 %v987_v10, 0.0 }
 0x1c5   : > { %v940_v12 = vpop.f32.mrf.mxu1 }
 0x1c6   : > { %v1029_v15 = vmax.f32 %v940_v12, 0.0 }
 0x1c8   : > { %v1059_v17 = vpack.c.bf16 %v1029_v15, %v1027_v13 }
 0x1ca   : > { %1211 = vmatmul.bf16.vlgmr.msrb.gmra.mxu3 %v1059_v17 }
 0x1cb   : > { %v989_v18 = vpop.f32.mrf.mxu2 }
 0x1cc   : > { %v1030_v21 = vmax.f32 %v989_v18, 0.0 }
 0x1cd   : > { %v943_v24 = vpop.f32.mrf.mxu1 }
 0x1ce   : > { %v1060_v25 = vpack.c.bf16 %v1030_v21, %v1028_v20  ;;  %v1031_v29 = vmax.f32 %v943_v24, 0.0 }
 0x1d0   : > { %1260 = vmatmul.bf16.vlgmr.msrb.gmra.mxu0 %v1060_v25 }
 0x1d3   : > { %v992_v26 = vpop.f32.mrf.mxu2 }
 0x1d4   : > { %v1032_v35 = vmax.f32 %v992_v26, 0.0 }
 0x1d5   : > { %v945_v28 = vpop.f32.mrf.mxu1 }
 0x1d6   : > { %v1033_v30 = vmax.f32 %v945_v28, 0.0 }
 0x1d8   : > { %v1061_v33 = vpack.c.bf16 %v1033_v30, %v1031_v29 }
 0x1da   : > { %1216 = vmatmul.bf16.gmra.mxu3 %v1061_v33 }
 0x1db   : > { %v994_v34 = vpop.f32.mrf.mxu2 }
 0x1dc   : > { %v1034_v37 = vmax.f32 %v994_v34, 0.0 }
 0x1dd   : > { %v948_v27 = vpop.f32.mrf.mxu1 }
 0x1de   : > { %v1062_v38 = vpack.c.bf16 %v1034_v37, %v1032_v35  ;;  %v1035_v43 = vmax.f32 %v948_v27, 0.0 }
 0x1e0   : > { %1265 = vmatmul.bf16.gmra.mxu0 %v1062_v38 }
 0x1e3   : > { %v997_v41 = vpop.f32.mrf.mxu2 }
 0x1e4   : > { %v1036_v47 = vmax.f32 %v997_v41, 0.0 }
 0x1e5   : > { %v950_v42 = vpop.f32.mrf.mxu1 }
 0x1e6   : > { %v1037_v44 = vmax.f32 %v950_v42, 0.0 }
 0x1e8   : > { %v1063_v45 = vpack.c.bf16 %v1037_v44, %v1035_v43 }
 0x1ea   : > { %1221 = vmatmul.bf16.gmra.mxu3 %v1063_v45 }
 0x1eb   : > { %v999_v46 = vpop.f32.mrf.mxu2 }
 0x1ec   : > { %v1038_v48 = vmax.f32 %v999_v46, 0.0 }
 0x1ed   : > { %v953_v49 = vpop.f32.mrf.mxu1 }
 0x1ee   : > { %v1064_v31 = vpack.c.bf16 %v1038_v48, %v1036_v47  ;;  %v1039_v55 = vmax.f32 %v953_v49, 0.0 }
 0x1f0   : > { %1270 = vmatmul.bf16.gmra.mxu0 %v1064_v31 }
 0x1f3   : > { %v1002_v50 = vpop.f32.mrf.mxu2 }
 0x1f4   : > { %v1040_v61 = vmax.f32 %v1002_v50, 0.0 }
 0x1f5   : > { %v955_v52 = vpop.f32.mrf.mxu1 }
 0x1f6   : > { %v1041_v56 = vmax.f32 %v955_v52, 0.0 }
 0x1f8   : > { %v1065_v58 = vpack.c.bf16 %v1041_v56, %v1039_v55 }
 0x1fa   : > { %1226 = vmatmul.bf16.gmra.mxu3 %v1065_v58 }
 0x1fb   : > { %v1004_v60 = vpop.f32.mrf.mxu2 }
 0x1fc   : > { %v1042_v62 = vmax.f32 %v1004_v60, 0.0 }
 0x1fd   : > { %v958_v0 = vpop.f32.mrf.mxu1 }
 0x1fe   : > { %v1066_v1 = vpack.c.bf16 %v1042_v62, %v1040_v61  ;;  %v1043_v4 = vmax.f32 %v958_v0, 0.0 }
 0x200   : > { %1275 = vmatmul.bf16.gmra.mxu0 %v1066_v1 }
 0x203   : > { %v1007_v2 = vpop.f32.mrf.mxu2 }
 0x204   : > { %v1044_v8 = vmax.f32 %v1007_v2, 0.0 }
 0x205   : > { %v960_v3 = vpop.f32.mrf.mxu1 }
 0x206   : > { %v1045_v5 = vmax.f32 %v960_v3, 0.0 }
 0x208   : > { %v1067_v6 = vpack.c.bf16 %v1045_v5, %v1043_v4 }
 0x20a   : > { %1231 = vmatmul.bf16.gmra.mxu3 %v1067_v6 }
 0x20b   : > { %v1009_v7 = vpop.f32.mrf.mxu2 }
 0x20c   : > { %v1046_v9 = vmax.f32 %v1009_v7, 0.0 }
 0x20d   : > { %v963_v10 = vpop.f32.mrf.mxu1 }
 0x20e   : > { %v1068_v12 = vpack.c.bf16 %v1046_v9, %v1044_v8  ;;  %v1047_v17 = vmax.f32 %v963_v10, 0.0 }
 0x210   : > { %1280 = vmatmul.bf16.gmra.mxu0 %v1068_v12 }
 0x213   : > { %v1012_v13 = vpop.f32.mrf.mxu2 }
 0x214   : > { %v1048_v24 = vmax.f32 %v1012_v13, 0.0 }
 0x215   : > { %v965_v15 = vpop.f32.mrf.mxu1 }
 0x216   : > { %v1049_v18 = vmax.f32 %v965_v15, 0.0 }
 0x218   : > { %v1069_v20 = vpack.c.bf16 %v1049_v18, %v1047_v17 }
 0x21a   : > { %1236 = vmatmul.bf16.gmra.mxu3 %v1069_v20 }
 0x21b   : > { %v1014_v21 = vpop.f32.mrf.mxu2 }
 0x21c   : > { %v1050_v25 = vmax.f32 %v1014_v21, 0.0 }
 0x21d   : > { %v968_v26 = vpop.f32.mrf.mxu1 }
 0x21e   : > { %v1070_v28 = vpack.c.bf16 %v1050_v25, %v1048_v24  ;;  %v1051_v33 = vmax.f32 %v968_v26, 0.0 }
 0x220   : > { %1285 = vmatmul.bf16.gmra.mxu0 %v1070_v28 }
 0x223   : > { %v1017_v29 = vpop.f32.mrf.mxu2 }
 0x224   : > { %v1052_v27 = vmax.f32 %v1017_v29, 0.0 }
 0x225   : > { %v970_v30 = vpop.f32.mrf.mxu1 }
 0x226   : > { %v1053_v34 = vmax.f32 %v970_v30, 0.0 }
 0x228   : > { %v1071_v35 = vpack.c.bf16 %v1053_v34, %v1051_v33 }
 0x22a   : > { %1241 = vmatmul.bf16.gmra.mxu3 %v1071_v35 }
 0x22b   : > { %v1019_v37 = vpop.f32.mrf.mxu2 }
 0x22c   : > { %v1054_v38 = vmax.f32 %v1019_v37, 0.0 }
 0x22d   : > { %v973_v41 = vpop.f32.mrf.mxu1 }
 0x22e   : > { %v1072_v42 = vpack.c.bf16 %v1054_v38, %v1052_v27  ;;  %v1055_v45 = vmax.f32 %v973_v41, 0.0 }
 0x230   : > { %1290 = vmatmul.bf16.gmra.mxu0 %v1072_v42 }
 0x233   : > { %v1022_v43 = vpop.f32.mrf.mxu2 }
 0x234   : > { %v1056_v49 = vmax.f32 %v1022_v43, 0.0 }
 0x235   : > { %v975_v44 = vpop.f32.mrf.mxu1 }
 0x236   : > { %v1057_v46 = vmax.f32 %v975_v44, 0.0 }
 0x238   : > { %v1073_v47 = vpack.c.bf16 %v1057_v46, %v1055_v45 }
 0x23a   : > { %1246 = vmatmul.bf16.gmra.mxu3 %v1073_v47 }
 0x23b   : > { %v1024_v48 = vpop.f32.mrf.mxu2 }
 0x23c   : > { %v1058_v31 = vmax.f32 %v1024_v48, 0.0 }
 0x23e   : > { %v1074_v50 = vpack.c.bf16 %v1058_v31, %v1056_v49 }
 0x240   : > { %1295 = vmatmul.bf16.gmra.mxu0 %v1074_v50 }
 0x24d   : > { %v1212_v52 = vpop.f32.mrf.mxu3  ;;  %v1261_v55 = vpop.f32.mrf.mxu0 }
 0x24e   : > { %v1262_v56 = vadd.f32 %v1261_v55, %v1212_v52 }
 0x250   : > { %v1301_v61 = vsub.f32 %v1262_v56, %v2337_v19 }
 0x252   : > { %v1317_v1 = vmul.f32 %v1301_v61, %v1301_v61 }
 0x255   : > { %v1214_v58 = vpop.f32.mrf.mxu3  ;;  %v1263_v60 = vpop.f32.mrf.mxu0 }
 0x256   : > { %v1264_v62 = vadd.f32 %v1263_v60, %v1214_v58 }
 0x258   : > { %v1302_v0 = vsub.f32 %v1264_v62, %v2340_v22 }
 0x25a   : > { %v1318_v2 = vmul.f32 %v1302_v0, %v1302_v0 }
 0x25c   : > { %v1333_v3 = vadd.f32 %v1318_v2, %v1317_v1 }
 0x25d   : > { %v1217_v4 = vpop.f32.mrf.mxu3  ;;  %v1266_v5 = vpop.f32.mrf.mxu0 }
 0x25e   : > { %v1267_v6 = vadd.f32 %v1266_v5, %v1217_v4 }
 0x260   : > { %v1303_v9 = vsub.f32 %v1267_v6, %v2347_v40 }
 0x262   : > { %v1319_v13 = vmul.f32 %v1303_v9, %v1303_v9 }
 0x265   : > { %v1219_v7 = vpop.f32.mrf.mxu3  ;;  %v1268_v8 = vpop.f32.mrf.mxu0 }
 0x266   : > { %v1269_v10 = vadd.f32 %v1268_v8, %v1219_v7 }
 0x268   : > { %v1304_v12 = vsub.f32 %v1269_v10, %v2351_v32 }
 0x26a   : > { %v1320_v15 = vmul.f32 %v1304_v12, %v1304_v12 }
 0x26c   : > { %v1334_v17 = vadd.f32 %v1320_v15, %v1319_v13 }
 0x26d   : > { %v1222_v19 = vpop.f32.mrf.mxu3  ;;  %v1271_v18 = vpop.f32.mrf.mxu0 }
 0x26e   : > { %v1341_v20 = vadd.f32 %v1334_v17, %v1333_v3  ;;  %v1272_v22 = vadd.f32 %v1271_v18, %v1222_v19 }
 0x270   : > { %v1305_v25 = vsub.f32 %v1272_v22, %v2360_v59 }
 0x272   : > { %v1321_v29 = vmul.f32 %v1305_v25, %v1305_v25 }
 0x275   : > { %v1224_v21 = vpop.f32.mrf.mxu3  ;;  %v1273_v24 = vpop.f32.mrf.mxu0 }
 0x276   : > { %v1274_v26 = vadd.f32 %v1273_v24, %v1224_v21 }
 0x278   : > { %v1306_v28 = vsub.f32 %v1274_v26, %v2356_v57 }
 0x27a   : > { %v1322_v30 = vmul.f32 %v1306_v28, %v1306_v28 }
 0x27c   : > { %v1335_v40 = vadd.f32 %v1322_v30, %v1321_v29 }
 0x27d   : > { %v1227_v33 = vpop.f32.mrf.mxu3  ;;  %v1276_v34 = vpop.f32.mrf.mxu0 }
 0x27e   : > { %v1277_v32 = vadd.f32 %v1276_v34, %v1227_v33 }
 0x280   : > { %v1307_v27 = vsub.f32 %v1277_v32, %v2366_v11 }
 0x282   : > { %v1323_v42 = vmul.f32 %v1307_v27, %v1307_v27 }
 0x285   : > { %v1229_v35 = vpop.f32.mrf.mxu3  ;;  %v1278_v37 = vpop.f32.mrf.mxu0 }
 0x286   : > { %v1279_v38 = vadd.f32 %v1278_v37, %v1229_v35 }
 0x288   : > { %v1308_v41 = vsub.f32 %v1279_v38, %v2371_v16 }
 0x28a   : > { %v1324_v43 = vmul.f32 %v1308_v41, %v1308_v41 }
 0x28c   : > { %v1336_v44 = vadd.f32 %v1324_v43, %v1323_v42 }
 0x28d   : > { %v1232_v59 = vpop.f32.mrf.mxu3  ;;  %v1281_v45 = vpop.f32.mrf.mxu0 }
 0x28e   : > { %v1342_v46 = vadd.f32 %v1336_v44, %v1335_v40  ;;  %v1282_v2 = vadd.f32 %v1281_v45, %v1232_v59 }
 0x290   : > { %v1345_v57 = vadd.f32 %v1342_v46, %v1341_v20  ;;  %v1309_v9 = vsub.f32 %v1282_v2, %v2378_v36 }
 0x295   : > { %v1234_v47 = vpop.f32.mrf.mxu3  ;;  %v1283_v48 = vpop.f32.mrf.mxu0 }
 0x296   : > { %v1284_v62 = vadd.f32 %v1283_v48, %v1234_v47 }
 0x298   : > { %v1310_v6 = vsub.f32 %v1284_v62, %v2381_v39 }
 0x29a   : > { %v1326_v19 = vmul.f32 %v1310_v6, %v1310_v6 }
 0x29d   : > { %v1237_v49 = vpop.f32.mrf.mxu3  ;;  %v1286_v31 = vpop.f32.mrf.mxu0 }
 0x29e   : > { %v1287_v0 = vadd.f32 %v1286_v31, %v1237_v49 }
 0x2a0   : > { %v1311_v7 = vsub.f32 %v1287_v0, %v2392_v63  ;;  %v1325_v63 = vmul.f32 %v1309_v9, %v1309_v9 }
 0x2a2   : > { %v1327_v18 = vmul.f32 %v1311_v7, %v1311_v7  ;;  %v1337_v24 = vadd.f32 %v1326_v19, %v1325_v63 }
 0x2a5   : > { %v1239_v50 = vpop.f32.mrf.mxu3  ;;  %v1288_v52 = vpop.f32.mrf.mxu0 }
 0x2a6   : > { %v1289_v16 = vadd.f32 %v1288_v52, %v1239_v50 }
 0x2a8   : > { %v1312_v3 = vsub.f32 %v1289_v16, %v2386_v54 }
 0x2aa   : > { %v1328_v13 = vmul.f32 %v1312_v3, %v1312_v3 }
 0x2ac   : > { %v1338_v22 = vadd.f32 %v1328_v13, %v1327_v18 }
 0x2ad   : > { %v1242_v55 = vpop.f32.mrf.mxu3  ;;  %v1291_v56 = vpop.f32.mrf.mxu0 }
 0x2ae   : > { %v1292_v4 = vadd.f32 %v1291_v56, %v1242_v55  ;;  %v1343_v28 = vadd.f32 %v1338_v22, %v1337_v24 }
 0x2b0   : > { %v1313_v15 = vsub.f32 %v1292_v4, %v2396_v14 }
 0x2b5   : > { %v1244_v58 = vpop.f32.mrf.mxu3  ;;  %v1293_v11 = vpop.f32.mrf.mxu0 }
 0x2b6   : > { %v1294_v1 = vadd.f32 %v1293_v11, %v1244_v58 }
 0x2b8   : > { %v1314_v8 = vsub.f32 %v1294_v1, %v2401_v23  ;;  %v1329_v23 = vmul.f32 %v1313_v15, %v1313_v15 }
 0x2ba   : > { %v1330_v20 = vmul.f32 %v1314_v8, %v1314_v8 }
 0x2bc   : > { %v1339_v25 = vadd.f32 %v1330_v20, %v1329_v23 }
 0x2bd   : > { %v1247_v60 = vpop.f32.mrf.mxu3  ;;  %v1296_v61 = vpop.f32.mrf.mxu0 }
 0x2be   : > { %v1297_v5 = vadd.f32 %v1296_v61, %v1247_v60 }
 0x2c0   : > { %v1315_v17 = vsub.f32 %v1297_v5, %v2408_v51 }
 0x2c2   : > { %v1331_v21 = vmul.f32 %v1315_v17, %v1315_v17 }
 0x2c5   : > { %v1249_v10 = vpop.f32.mrf.mxu3  ;;  %v1298_v12 = vpop.f32.mrf.mxu0 }
 0x2c6   : > { %v1299_v54 = vadd.f32 %v1298_v12, %v1249_v10 }
 0x2c8   : > { %v1316_v39 = vsub.f32 %v1299_v54, %v2411_v53 }
 0x2ca   : > { %v1332_v36 = vmul.f32 %v1316_v39, %v1316_v39 }
 0x2cc   : > { %v1340_v26 = vadd.f32 %v1332_v36, %v1331_v21 }
 0x2ce   : > { %v1344_v14 = vadd.f32 %v1340_v26, %v1339_v25 }
 0x2d0   : > { %v1346_v51 = vadd.f32 %v1344_v14, %v1343_v28 }
 0x2d2   : > { %v1347_v29 = vadd.f32 %v1346_v51, %v1345_v57 }
 0x2d4   : > { %1348 = vst [vmem:[%s393_s13] sm:$0xff] %v1347_v29 }
 0x2d5 PF: > { %p19_p4 = scmp.ge.s32.totalorder %s2103_s11, 6   ;;  %s2461_s24 = smov %s1981_s25 }
 0x2d6   : > { %s2462_s25 = smov %s1985_s26  ;;  %s2463_s26 = smov %s2113_s15 }
 0x2d7   : > { %s2464_s27 = smov %s2103_s11  ;;  %21 = sbr.rel (!%p19_p4) target bundleno = 5 (0x5), region = 106 }
 0x2dc   :  { %1368 = vsyncpa [#allocation3], 1 }
 0x2dd   :  { %1370 = vsyncpa [#allocation3 + $0x1], 1 }
 0x2de   :  { %1371 = vsyncpa [#allocation5], 1 }
 0x2df   :  { %1372 = vsyncpa [#allocation8], 1 }

</bundles_post_ra>
